<compile_context>
chip_gen: v5e
topology: v5e:2x2
jax: 0.10.0
libtpu: 0.0.40
codegen_flags: <defaults>
</compile_context>

<pallas_src>
import math

import jax
import jax.numpy as jnp
from jax.experimental import pallas as pl
from jax.experimental.pallas import tpu as pltpu

# Conservative per-kernel working-set target: fits comfortably inside v7x's 64 MiB
# physical VMEM (and trivially inside v5e/v6e's 128 MiB) with headroom for the compiler.
_VMEM_BUDGET = 40 * 1024 * 1024


def _round_up(v, m):
    return ((v + m - 1) // m) * m


def _tile_vmem_bytes(tm, tk, tn, itemsize):
    # double-buffered x / weight / bias / out streams + f32 accumulator scratch
    return ((2 * tm * tk + 2 * tk * tn + 2 * tn + 2 * tm * tn) * itemsize
            + tm * tn * 4)


def _choose_tiles(m, k, n_pad, itemsize):
    # N tile: lane-dense multiple of 128, bounded so the weight block stays small on
    # v7x even for very wide layers.
    if n_pad <= 1024:
        tn = n_pad
    else:
        tn = 128
        for cand in (1024, 512, 256):
            if n_pad % cand == 0:
                tn = cand
                break
    # K tile: full K unless K is large AND evenly divisible by a nice chunk.
    # (Only exact divisions are used -> never accumulate garbage from ragged K blocks.)
    tk = k
    if k > 2048:
        for cand in (2048, 1024, 512, 256):
            if k % cand == 0:
                tk = cand
                break
    # M tile: single tile for small m; otherwise target 512 rows (mem-bound roofline
    # sweet spot), shrinking in 128-row steps until the VMEM budget is met.
    if m <= 512:
        tm = m
    else:
        tm = 512
        while tm > 128 and _tile_vmem_bytes(tm, tk, tn, itemsize) > _VMEM_BUDGET:
            tm -= 128
    return tm, tk, tn


def _linear_kernel(x_ref, w_ref, b_ref, o_ref, acc_ref):
    # x_ref: (tm, tk)   w_ref: (tk, tn)   b_ref: (1, tn)   o_ref: (tm, tn)
    k = pl.program_id(2)

    @pl.when(k == 0)
    def _init():
        acc_ref[...] = jnp.zeros_like(acc_ref)

    # Plain NN contraction: weight was pre-transposed once in the wrapper, so the MXU
    # is fed directly (no per-step transpose competing for vector-extended slots).
    acc_ref[...] += jnp.dot(
        x_ref[...], w_ref[...], preferred_element_type=jnp.float32
    )

    @pl.when(k == pl.num_programs(2) - 1)
    def _finalize():
        o_ref[...] = (
            acc_ref[...] + b_ref[...].astype(jnp.float32)
        ).astype(o_ref.dtype)


def basic_project2_forward(x, weight, bias):
    """y = x @ weight.T + bias, matching torch.nn.Linear(input_ch, output_ch) semantics.

    x:      (..., input_ch)
    weight: (output_ch, input_ch)   -- native PyTorch layout
    bias:   (output_ch,)
    """
    output_ch, input_ch = weight.shape
    assert x.shape[-1] == input_ch

    lead_shape = x.shape[:-1]
    m = int(math.prod(lead_shape))
    x2d = x.reshape(m, input_ch)

    itemsize = jnp.dtype(x.dtype).itemsize
    n_pad = _round_up(max(output_ch, 128), 128)          # lane-dense output / weight
    tm, tk, tn = _choose_tiles(m, input_ch, n_pad, itemsize)

    # One cheap XLA transpose of the (small) weight, amortized over M*N*K compute.
    w_kn = weight.T                                       # (K, N)
    if n_pad != output_ch:
        w_kn = jnp.pad(w_kn, ((0, 0), (0, n_pad - output_ch)))
        b_p = jnp.pad(bias, (0, n_pad - output_ch))
    else:
        b_p = bias
    b2d = b_p.reshape(1, n_pad)

    # No jnp.pad on x: ragged last M tile handled by Pallas (OOB rows never written).
    grid = (pl.cdiv(m, tm), n_pad // tn, input_ch // tk)

    vmem_need = _tile_vmem_bytes(tm, tk, tn, itemsize)
    vmem_limit = int(min(max(int(vmem_need * 1.5), 32 * 1024 * 1024),
                         56 * 1024 * 1024))

    cost = pl.CostEstimate(
        flops=2 * m * input_ch * n_pad,
        transcendentals=0,
        bytes_accessed=itemsize
        * (m * input_ch + input_ch * n_pad + n_pad + m * n_pad),
    )

    out = pl.pallas_call(
        _linear_kernel,
        out_shape=jax.ShapeDtypeStruct((m, n_pad), x.dtype),
        grid_spec=pltpu.PrefetchScalarGridSpec(
            num_scalar_prefetch=0,
            grid=grid,
            in_specs=[
                pl.BlockSpec((tm, tk), lambda i, j, k: (i, k)),   # streamed x tile
                pl.BlockSpec((tk, tn), lambda i, j, k: (k, j)),   # weight tile (VMEM-resident when grid_n=grid_k=1)
                pl.BlockSpec((1, tn), lambda i, j, k: (0, j)),    # bias tile
            ],
            out_specs=pl.BlockSpec((tm, tn), lambda i, j, k: (i, j)),
            scratch_shapes=[pltpu.VMEM((tm, tn), jnp.float32)],
        ),
        compiler_params=pltpu.CompilerParams(
            dimension_semantics=("parallel", "parallel", "arbitrary"),
            vmem_limit_bytes=vmem_limit,
        ),
        cost_estimate=cost,
    )(x2d, w_kn, b2d)

    if n_pad != output_ch:
        out = out[:, :output_ch]
    return out.reshape(*lead_shape, output_ch)


if __name__ == "__main__":
    key = jax.random.PRNGKey(0)
    k_x, k_w, k_b = jax.random.split(key, 3)

    batch, seq, input_ch, output_ch = 2, 8, 32, 64

    # Deterministic parameter init (PyTorch Linear-style uniform bound).
    bound = 1.0 / (input_ch ** 0.5)
    weight = jax.random.uniform(
        k_w, (output_ch, input_ch), jnp.float32, minval=-bound, maxval=bound
    )
    bias = jax.random.uniform(
        k_b, (output_ch,), jnp.float32, minval=-bound, maxval=bound
    )
    x = jax.random.normal(k_x, (batch, seq, input_ch), jnp.float32)

    fwd = jax.jit(basic_project2_forward)
    y = fwd(x, weight, bias)
    jax.block_until_ready(y)

    # Reference check against plain JAX.
    y_ref = x @ weight.T + bias
    assert y.shape == (batch, seq, output_ch)
    assert jnp.allclose(y, y_ref, atol=1e-5, rtol=1e-5)

    print("KERNEL_OK")
</pallas_src>

<mosaic_0001>
module attributes {stable_mosaic.version = 11 : i64} {
  func.func @_linear_kernel(%arg0: i32, %arg1: i32, %arg2: i32, %arg3: memref<16x32xf32, #tpu.memory_space<vmem>>, %arg4: memref<32x128xf32, #tpu.memory_space<vmem>>, %arg5: memref<1x128xf32, #tpu.memory_space<vmem>>, %arg6: memref<16x128xf32, #tpu.memory_space<vmem>>, %arg7: memref<16x128xf32, #tpu.memory_space<vmem>>) attributes {dimension_semantics = [#tpu.dimension_semantics<parallel>, #tpu.dimension_semantics<parallel>, #tpu.dimension_semantics<arbitrary>], iteration_bounds = array<i64: 1, 1, 1>, scalar_prefetch = 0 : i64, scratch_operands = 1 : i64, tpu.core_type = #tpu.core_type<tc>, window_params = [{transform_indices = @transform_0, window_bounds = array<i64: 16, 32>}, {transform_indices = @transform_1, window_bounds = array<i64: 32, 128>}, {transform_indices = @transform_2, window_bounds = array<i64: 1, 128>}, {transform_indices = @transform_3, window_bounds = array<i64: 16, 128>}]} {
    %c0_i32 = arith.constant 0 : i32
    %0 = arith.cmpi eq, %arg2, %c0_i32 : i32
    %1 = arith.extui %0 : i1 to i32
    %c0_i32_0 = arith.constant 0 : i32
    %2 = arith.cmpi ne, %1, %c0_i32_0 : i32
    scf.if %2 {
      %cst_10 = arith.constant 0.000000e+00 : f32
      %12 = vector.broadcast %cst_10 : f32 to vector<16x128xf32>
      %c0_11 = arith.constant 0 : index
      %c0_12 = arith.constant 0 : index
      %13 = vector.load %arg7[%c0_11, %c0_12] : memref<16x128xf32, #tpu.memory_space<vmem>>, vector<16x128xf32>
      tpu.vector_store %arg7[%c0_11, %c0_12], %12 {strides = array<i32>} : memref<16x128xf32, #tpu.memory_space<vmem>>, vector<16x128xf32>,
    } else {
    }
    %c0 = arith.constant 0 : index
    %c0_1 = arith.constant 0 : index
    %3 = vector.load %arg7[%c0, %c0_1] : memref<16x128xf32, #tpu.memory_space<vmem>>, vector<16x128xf32>
    %c0_2 = arith.constant 0 : index
    %c0_3 = arith.constant 0 : index
    %4 = vector.load %arg3[%c0_2, %c0_3] : memref<16x32xf32, #tpu.memory_space<vmem>>, vector<16x32xf32>
    %c0_4 = arith.constant 0 : index
    %c0_5 = arith.constant 0 : index
    %5 = vector.load %arg4[%c0_4, %c0_5] : memref<32x128xf32, #tpu.memory_space<vmem>>, vector<32x128xf32>
    %cst = arith.constant dense<0.000000e+00> : vector<16x128xf32>
    %6 = tpu.matmul %4, %5, %cst {dimension_numbers = #tpu.dot_dimension_numbers<[1], [0], [0], [1], [0, 0, 1, 1], [], []>} : vector<16x32xf32>, vector<32x128xf32>, vector<16x128xf32> -> vector<16x128xf32>
    %7 = arith.addf %3, %6 : vector<16x128xf32>
    %c0_6 = arith.constant 0 : index
    %c0_7 = arith.constant 0 : index
    %8 = vector.load %arg7[%c0_6, %c0_7] : memref<16x128xf32, #tpu.memory_space<vmem>>, vector<16x128xf32>
    tpu.vector_store %arg7[%c0_6, %c0_7], %7 {strides = array<i32>} : memref<16x128xf32, #tpu.memory_space<vmem>>, vector<16x128xf32>,
    %c0_i32_8 = arith.constant 0 : i32
    %9 = arith.cmpi eq, %arg2, %c0_i32_8 : i32
    %10 = arith.extui %9 : i1 to i32
    %c0_i32_9 = arith.constant 0 : i32
    %11 = arith.cmpi ne, %10, %c0_i32_9 : i32
    scf.if %11 {
      %c0_10 = arith.constant 0 : index
      %c0_11 = arith.constant 0 : index
      %12 = vector.load %arg7[%c0_10, %c0_11] : memref<16x128xf32, #tpu.memory_space<vmem>>, vector<16x128xf32>
      %c0_12 = arith.constant 0 : index
      %c0_13 = arith.constant 0 : index
      %13 = vector.load %arg5[%c0_12, %c0_13] : memref<1x128xf32, #tpu.memory_space<vmem>>, vector<1x128xf32>
      %14 = vector.broadcast %13 : vector<1x128xf32> to vector<16x128xf32>
      %15 = arith.addf %12, %14 : vector<16x128xf32>
      %c0_14 = arith.constant 0 : index
      %c0_15 = arith.constant 0 : index
      %16 = vector.load %arg6[%c0_14, %c0_15] : memref<16x128xf32, #tpu.memory_space<vmem>>, vector<16x128xf32>
      tpu.vector_store %arg6[%c0_14, %c0_15], %15 {strides = array<i32>} : memref<16x128xf32, #tpu.memory_space<vmem>>, vector<16x128xf32>,
    } else {
    }
    return
  }
  func.func @transform_0(%arg0: i32, %arg1: i32, %arg2: i32) -> (i32, i32) {
    %c0_i32 = arith.constant 0 : i32
    return %arg0, %arg2 : i32, i32
  }
  func.func @transform_1(%arg0: i32, %arg1: i32, %arg2: i32) -> (i32, i32) {
    %c0_i32 = arith.constant 0 : i32
    return %arg2, %arg1 : i32, i32
  }
  func.func @transform_2(%arg0: i32, %arg1: i32, %arg2: i32) -> (i32, i32) {
    %c0_i32 = arith.constant 0 : i32
    %c0_i32_0 = arith.constant 0 : i32
    return %c0_i32, %arg1 : i32, i32
  }
  func.func @transform_3(%arg0: i32, %arg1: i32, %arg2: i32) -> (i32, i32) {
    %c0_i32 = arith.constant 0 : i32
    return %arg0, %arg1 : i32, i32
  }
}

</mosaic_0001>

<bundles_post_ra>
// kernel: basic_project2_forward.1
= control target key start
LH: loop header
LB: loop body
LE: loop exit
PB: predicated region body
PF: predicated region fallthrough
CT: control target
= control target key end

     0   :  { %vm28_vm0 = vcmask 261120   ;;  %s133_s1 = inlined_call_operand.vmem [shape: f32[32,128], index: 1, kind: input, shape index: {}]   ;;  %s134_s2 = inlined_call_operand.vmem [shape: f32[1,128], index: 2, kind: input, shape index: {}]   ;;  %s135_s0 = inlined_call_operand.vmem [shape: f32[16,32], index: 0, kind: input, shape index: {}]   ;;  %s136_s3 = inlined_call_operand.vmem [shape: f32[16,128], index: 3, kind: output, shape index: {}]  }
   0x1   :  { %v27_v0 = vld [vmem:[%s133_s1 + $0x18] sm:$0xff]  ;;  %v26_v1 = vld [vmem:[%s133_s1 + $0x10] sm:$0xff]  ;;  %v25_v2 = vld [vmem:[%s133_s1 + $0x8] sm:$0xff] }
   0x2   :  { %47 = vmatpush.msra.mxu0 %v27_v0  ;;  %81 = vmatpush.msra.mxu1 %v27_v0  ;;  %v24_v3 = vld [vmem:[%s133_s1] sm:$0xff]  ;;  %v23_v5 = vld [vmem:[%s135_s0 + $0x8] sm:$0xff] }
   0x3   :  { %v22_v4 = vld [vmem:[%s135_s0] sm:$0xff] }
   0x4   :  { %48 = vmatpush.msra.mxu0 %v26_v1  ;;  %82 = vmatpush.msra.mxu1 %v26_v1  ;;  %v85_v6 = vld [vmem:[%s134_s2] ss:$0 sm:$0xff] }
   0x6   :  { %49 = vmatpush.msra.mxu0 %v25_v2  ;;  %83 = vmatpush.msra.mxu1 %v25_v2 }
   0x8   :  { %50 = vmatpush.msra.mxu0 %v24_v3  ;;  %84 = vmatpush.msra.mxu1 %v24_v3 }
   0x9   :  { %79 = vmatmul.msk.f32.vlgmr.msra.gmra.mxu0 %vm28_vm0, %v22_v4  ;;  %80 = vmatmul.msk.f32.vlgmr.msra.gmra.mxu1 %vm28_vm0, %v23_v5 }
  0x86   :  { %v52_v7 = vpop.f32.mrf.mxu0  ;;  %v55_v8 = vpop.f32.mrf.mxu1 }
  0x87   :  { %v71_v9 = vadd.f32 %v85_v6, %v52_v7  ;;  %v72_v10 = vadd.f32 %v85_v6, %v55_v8 }
  0x89   :  { %73 = vst [vmem:[%s136_s3] sm:$0xff] %v71_v9 }
  0x8a   :  { %74 = vst [vmem:[%s136_s3 + $0x8] sm:$0xff] %v72_v10 }

</bundles_post_ra>
